<compile_context>
chip_gen: v6e
topology: v6e:2x2x1
jax: 0.10.0
libtpu: 0.0.40
codegen_flags: <defaults>
</compile_context>

<pallas_src>
import functools

import jax
import jax.numpy as jnp
from jax.experimental import pallas as pl
from jax.experimental.pallas import tpu as pltpu


# ----------------------------- kernel bodies ------------------------------

_MIX1 = 0x5BD1E995   # all constants fit in int32
_MIX2 = 0x27D4EB2F
_MIX3 = 0x165667B1


def _linear_relu(x, w_ref, b_ref):
    """relu(x @ W + b) with f32 accumulation on the MXU."""
    y = jnp.dot(x, w_ref[...], preferred_element_type=jnp.float32)
    y = y + b_ref[...].astype(jnp.float32)          # (tm, d) + (1, d)
    return jnp.maximum(y, 0.0)


def _dropout(v, seed, row0, salt, keep_threshold, inv_keep):
    """Inverted dropout via a counter-based int32 hash (portable, stateless).

    Mask depends only on (seed, global row, col, layer salt), so it is
    invariant to tiling and grid iteration order.
    """
    r = jax.lax.broadcasted_iota(jnp.int32, v.shape, 0) + row0
    c = jax.lax.broadcasted_iota(jnp.int32, v.shape, 1)
    salt_c = jnp.int32((salt * 0x3243F6A9) & 0x7FFFFFFF)
    x = (r * jnp.int32(_MIX1) + c * jnp.int32(_MIX2)
         + seed * jnp.int32(_MIX3) + salt_c)
    # xorshift-multiply mixing; int32 wraparound is well-defined in XLA.
    x = (x ^ (x >> 15)) * jnp.int32(_MIX2)
    x = (x ^ (x >> 13)) * jnp.int32(_MIX3)
    x = x ^ (x >> 16)
    keep = (x & jnp.int32(0x7FFFFFFF)) < jnp.int32(keep_threshold)
    return jnp.where(keep, v * jnp.asarray(inv_keep, v.dtype),
                     jnp.zeros((), v.dtype))


def _prenet_kernel_eval(x_ref, w1_ref, b1_ref, w2_ref, b2_ref, o_ref):
    h = _linear_relu(x_ref[...], w1_ref, b1_ref).astype(w2_ref.dtype)
    y = _linear_relu(h, w2_ref, b2_ref)
    o_ref[...] = y.astype(o_ref.dtype)


def _prenet_kernel_train(seed_ref, x_ref, w1_ref, b1_ref, w2_ref, b2_ref,
                         o_ref, *, dropout_p, row_tile):
    # Static (trace-time) dropout constants; compare against 31 random bits.
    keep_threshold = min(int(round((1.0 - dropout_p) * 2.0 ** 31)), 2 ** 31 - 1)
    inv_keep = 1.0 / (1.0 - dropout_p)

    seed = seed_ref[0]
    row0 = pl.program_id(0) * row_tile          # global row offset

    h = _linear_relu(x_ref[...], w1_ref, b1_ref).astype(w2_ref.dtype)
    h = _dropout(h, seed, row0, 1, keep_threshold, inv_keep)  # compute dtype
    y = _linear_relu(h, w2_ref, b2_ref).astype(o_ref.dtype)
    y = _dropout(y, seed, row0, 2, keep_threshold, inv_keep)
    o_ref[...] = y


# ------------------------------- wrapper ----------------------------------


def _round_up(n, m):
    return ((n + m - 1) // m) * m


def _pad2(a, s0, s1):
    """Zero-pad 2-D array to (s0, s1); no-op (no HBM pass) when aligned."""
    if a.shape == (s0, s1):
        return a
    return jnp.zeros((s0, s1), a.dtype).at[:a.shape[0], :a.shape[1]].set(a)


def decoder_prenet(x, w1, b1, w2, b2, *, dropout_p=0.2, training=False,
                   seed=0, row_tile=None, compute_dtype=None):
    """x: (B, T, d_input).  w1: (d_input, d_hidden), w2: (d_hidden, d_output)
    (i.e. nn.Linear weights pre-transposed).  Returns (B, T, d_output)."""
    B, T, d_input = x.shape
    d_hidden = w1.shape[1]
    d_output = w2.shape[1]
    N = B * T
    out_dtype = x.dtype
    cdt = jnp.dtype(compute_dtype) if compute_dtype is not None else jnp.dtype(x.dtype)

    # Lane-dense padding of the feature dims (multiples of 128).
    d_in_p = _round_up(d_input, 128)
    d_h_p = _round_up(d_hidden, 128)
    d_out_p = _round_up(d_output, 128)

    dsz = cdt.itemsize
    osz = jnp.dtype(out_dtype).itemsize

    # Row tile: 512 default (1024 for small feature dims), clamped by an
    # explicit VMEM budget covering double-buffered x/out tiles, the
    # (double-buffered) resident weights and the f32 intermediates.  A 32 MiB
    # budget leaves headroom on every generation incl. v7x (64 MiB physical).
    if row_tile is None:
        row_tile = 1024 if max(d_in_p, d_h_p, d_out_p) <= 256 else 512
    weight_bytes = 2 * (d_in_p * d_h_p + d_h_p * d_out_p + d_h_p + d_out_p) * dsz
    per_row_bytes = (2 * (d_in_p * dsz + d_out_p * osz)   # double-buffered tiles
                     + d_h_p * (4 + dsz + 4)              # f32 h, cast h, mask
                     + d_out_p * (4 + 4))                 # f32 y, mask
    vmem_budget = 32 * 1024 * 1024
    max_rows = max(8, ((vmem_budget - weight_bytes) // max(per_row_bytes, 1)) // 8 * 8)
    row_tile = max(8, (min(row_tile, _round_up(N, 8), max_rows) // 8) * 8)
    N_p = _round_up(N, row_tile)
    grid = (N_p // row_tile,)

    # Cast once, pad only if not already aligned (padded hidden/output
    # columns stay exactly zero through relu/dropout, so slicing recovers
    # the exact result).
    x2 = _pad2(x.reshape(N, d_input).astype(cdt), N_p, d_in_p)
    w1_p = _pad2(w1.astype(cdt), d_in_p, d_h_p)
    b1_p = _pad2(b1.reshape(1, d_hidden).astype(cdt), 1, d_h_p)
    w2_p = _pad2(w2.astype(cdt), d_h_p, d_out_p)
    b2_p = _pad2(b2.reshape(1, d_output).astype(cdt), 1, d_out_p)

    # index_maps accept (grid_idx, *optional_prefetch_refs).
    in_specs = [
        pl.BlockSpec((row_tile, d_in_p), lambda i, *_: (i, 0)),
        pl.BlockSpec((d_in_p, d_h_p), lambda i, *_: (0, 0)),
        pl.BlockSpec((1, d_h_p), lambda i, *_: (0, 0)),
        pl.BlockSpec((d_h_p, d_out_p), lambda i, *_: (0, 0)),
        pl.BlockSpec((1, d_out_p), lambda i, *_: (0, 0)),
    ]
    out_spec = pl.BlockSpec((row_tile, d_out_p), lambda i, *_: (i, 0))
    out_shape = jax.ShapeDtypeStruct((N_p, d_out_p), out_dtype)

    compiler_params = pltpu.CompilerParams(
        dimension_semantics=("parallel",),   # dropout mask is grid-order free
        vmem_limit_bytes=int(min(64 * 1024 * 1024,
                                 max(16 * 1024 * 1024,
                                     weight_bytes + row_tile * per_row_bytes
                                     + 4 * 1024 * 1024))))
    cost = pl.CostEstimate(
        flops=int(2 * N_p * (d_in_p * d_h_p + d_h_p * d_out_p)),
        transcendentals=0,
        bytes_accessed=int((x2.size + w1_p.size + b1_p.size + w2_p.size
                            + b2_p.size) * dsz + N_p * d_out_p * osz))

    if training and dropout_p > 0.0:
        seed_arr = jnp.asarray([seed], dtype=jnp.int32)
        kernel = functools.partial(_prenet_kernel_train,
                                   dropout_p=float(dropout_p),
                                   row_tile=int(row_tile))
        out2 = pl.pallas_call(
            kernel,
            out_shape=out_shape,
            grid_spec=pltpu.PrefetchScalarGridSpec(
                num_scalar_prefetch=1,        # dropout seed lives in SMEM
                grid=grid,
                in_specs=in_specs,
                out_specs=out_spec),
            compiler_params=compiler_params,
            cost_estimate=cost,
        )(seed_arr, x2, w1_p, b1_p, w2_p, b2_p)
    else:
        out2 = pl.pallas_call(
            _prenet_kernel_eval,
            out_shape=out_shape,
            grid_spec=pltpu.PrefetchScalarGridSpec(
                num_scalar_prefetch=0,
                grid=grid,
                in_specs=in_specs,
                out_specs=out_spec),
            compiler_params=compiler_params,
            cost_estimate=cost,
        )(x2, w1_p, b1_p, w2_p, b2_p)

    if (N_p, d_out_p) != (N, d_output):
        out2 = out2[:N, :d_output]
    return out2.reshape(B, T, d_output)


# ------------------------------- example ----------------------------------


def _init_params(key, d_input, d_hidden, d_output):
    """nn.Linear-style init; weights stored transposed as (d_in, d_out)."""
    k1, k2, k3, k4 = jax.random.split(key, 4)
    lim1 = 1.0 / (d_input ** 0.5)
    lim2 = 1.0 / (d_hidden ** 0.5)
    w1 = jax.random.uniform(k1, (d_input, d_hidden), jnp.float32, -lim1, lim1)
    b1 = jax.random.uniform(k2, (d_hidden,), jnp.float32, -lim1, lim1)
    w2 = jax.random.uniform(k3, (d_hidden, d_output), jnp.float32, -lim2, lim2)
    b2 = jax.random.uniform(k4, (d_output,), jnp.float32, -lim2, lim2)
    return w1, b1, w2, b2


if __name__ == "__main__":
    key = jax.random.PRNGKey(0)
    kx, kp = jax.random.split(key)

    B, T = 2, 8
    d_input, d_hidden, d_output = 32, 64, 32

    x = jax.random.normal(kx, (B, T, d_input), dtype=jnp.float32)
    w1, b1, w2, b2 = _init_params(kp, d_input, d_hidden, d_output)

    ref = jnp.maximum(jnp.maximum(x @ w1 + b1, 0.0) @ w2 + b2, 0.0)

    # Eval mode, f32 compute (dropout = identity, like module.eval()).
    y = decoder_prenet(x, w1, b1, w2, b2, dropout_p=0.2, training=False)
    y = jax.block_until_ready(y)
    assert y.shape == (B, T, d_output)
    assert jnp.allclose(y, ref, atol=1e-5, rtol=1e-5)

    # Eval mode, bf16 MXU fast path (f32 accumulation) — looser tolerance.
    yb = decoder_prenet(x, w1, b1, w2, b2, dropout_p=0.2, training=False,
                        compute_dtype=jnp.bfloat16)
    yb = jax.block_until_ready(yb)
    assert yb.shape == (B, T, d_output)
    assert jnp.allclose(yb, ref, atol=5e-2, rtol=5e-2)

    # Training mode: exercises the in-kernel hash-based dropout (not
    # bit-matched to torch's RNG stream); check it runs and is finite.
    yt = decoder_prenet(x, w1, b1, w2, b2, dropout_p=0.2, training=True,
                        seed=1, compute_dtype=jnp.bfloat16)
    yt = jax.block_until_ready(yt)
    assert yt.shape == (B, T, d_output)
    assert bool(jnp.all(jnp.isfinite(yt)))

    print("KERNEL_OK")
</pallas_src>

<mosaic_0001>
module attributes {stable_mosaic.version = 11 : i64} {
  func.func @_prenet_kernel_eval(%arg0: i32, %arg1: memref<16x128xf32, #tpu.memory_space<vmem>>, %arg2: memref<128x128xf32, #tpu.memory_space<vmem>>, %arg3: memref<1x128xf32, #tpu.memory_space<vmem>>, %arg4: memref<128x128xf32, #tpu.memory_space<vmem>>, %arg5: memref<1x128xf32, #tpu.memory_space<vmem>>, %arg6: memref<16x128xf32, #tpu.memory_space<vmem>>) attributes {dimension_semantics = [#tpu.dimension_semantics<parallel>], iteration_bounds = array<i64: 1>, scalar_prefetch = 0 : i64, scratch_operands = 0 : i64, tpu.core_type = #tpu.core_type<tc>, window_params = [{transform_indices = @transform_0, window_bounds = array<i64: 16, 128>}, {pipeline_mode = #tpu.pipeline_mode<synchronous>, transform_indices = @transform_1, window_bounds = array<i64: 128, 128>}, {pipeline_mode = #tpu.pipeline_mode<synchronous>, transform_indices = @transform_2, window_bounds = array<i64: 1, 128>}, {pipeline_mode = #tpu.pipeline_mode<synchronous>, transform_indices = @transform_3, window_bounds = array<i64: 128, 128>}, {pipeline_mode = #tpu.pipeline_mode<synchronous>, transform_indices = @transform_4, window_bounds = array<i64: 1, 128>}, {transform_indices = @transform_5, window_bounds = array<i64: 16, 128>}]} {
    %c0 = arith.constant 0 : index
    %c0_0 = arith.constant 0 : index
    %0 = vector.load %arg1[%c0, %c0_0] : memref<16x128xf32, #tpu.memory_space<vmem>>, vector<16x128xf32>
    %c0_1 = arith.constant 0 : index
    %c0_2 = arith.constant 0 : index
    %1 = vector.load %arg2[%c0_1, %c0_2] : memref<128x128xf32, #tpu.memory_space<vmem>>, vector<128x128xf32>
    %cst = arith.constant dense<0.000000e+00> : vector<16x128xf32>
    %2 = tpu.matmul %0, %1, %cst {dimension_numbers = #tpu.dot_dimension_numbers<[1], [0], [0], [1], [0, 0, 1, 1], [], []>} : vector<16x128xf32>, vector<128x128xf32>, vector<16x128xf32> -> vector<16x128xf32>
    %c0_3 = arith.constant 0 : index
    %c0_4 = arith.constant 0 : index
    %3 = vector.load %arg3[%c0_3, %c0_4] : memref<1x128xf32, #tpu.memory_space<vmem>>, vector<1x128xf32>
    %4 = vector.broadcast %3 : vector<1x128xf32> to vector<16x128xf32>
    %5 = arith.addf %2, %4 : vector<16x128xf32>
    %cst_5 = arith.constant 0.000000e+00 : f32
    %6 = vector.broadcast %cst_5 : f32 to vector<16x128xf32>
    %7 = arith.maximumf %5, %6 : vector<16x128xf32>
    %c0_6 = arith.constant 0 : index
    %c0_7 = arith.constant 0 : index
    %8 = vector.load %arg4[%c0_6, %c0_7] : memref<128x128xf32, #tpu.memory_space<vmem>>, vector<128x128xf32>
    %cst_8 = arith.constant dense<0.000000e+00> : vector<16x128xf32>
    %9 = tpu.matmul %7, %8, %cst_8 {dimension_numbers = #tpu.dot_dimension_numbers<[1], [0], [0], [1], [0, 0, 1, 1], [], []>} : vector<16x128xf32>, vector<128x128xf32>, vector<16x128xf32> -> vector<16x128xf32>
    %c0_9 = arith.constant 0 : index
    %c0_10 = arith.constant 0 : index
    %10 = vector.load %arg5[%c0_9, %c0_10] : memref<1x128xf32, #tpu.memory_space<vmem>>, vector<1x128xf32>
    %11 = vector.broadcast %10 : vector<1x128xf32> to vector<16x128xf32>
    %12 = arith.addf %9, %11 : vector<16x128xf32>
    %cst_11 = arith.constant 0.000000e+00 : f32
    %13 = vector.broadcast %cst_11 : f32 to vector<16x128xf32>
    %14 = arith.maximumf %12, %13 : vector<16x128xf32>
    %c0_12 = arith.constant 0 : index
    %c0_13 = arith.constant 0 : index
    %15 = vector.load %arg6[%c0_12, %c0_13] : memref<16x128xf32, #tpu.memory_space<vmem>>, vector<16x128xf32>
    tpu.vector_store %arg6[%c0_12, %c0_13], %14 {strides = array<i32>} : memref<16x128xf32, #tpu.memory_space<vmem>>, vector<16x128xf32>,
    return
  }
  func.func @transform_0(%arg0: i32) -> (i32, i32) {
    %c0_i32 = arith.constant 0 : i32
    %c0_i32_0 = arith.constant 0 : i32
    return %arg0, %c0_i32 : i32, i32
  }
  func.func @transform_1(%arg0: i32) -> (i32, i32) {
    %c0_i32 = arith.constant 0 : i32
    %c0_i32_0 = arith.constant 0 : i32
    %c0_i32_1 = arith.constant 0 : i32
    return %c0_i32, %c0_i32_0 : i32, i32
  }
  func.func @transform_2(%arg0: i32) -> (i32, i32) {
    %c0_i32 = arith.constant 0 : i32
    %c0_i32_0 = arith.constant 0 : i32
    %c0_i32_1 = arith.constant 0 : i32
    return %c0_i32, %c0_i32_0 : i32, i32
  }
  func.func @transform_3(%arg0: i32) -> (i32, i32) {
    %c0_i32 = arith.constant 0 : i32
    %c0_i32_0 = arith.constant 0 : i32
    %c0_i32_1 = arith.constant 0 : i32
    return %c0_i32, %c0_i32_0 : i32, i32
  }
  func.func @transform_4(%arg0: i32) -> (i32, i32) {
    %c0_i32 = arith.constant 0 : i32
    %c0_i32_0 = arith.constant 0 : i32
    %c0_i32_1 = arith.constant 0 : i32
    return %c0_i32, %c0_i32_0 : i32, i32
  }
  func.func @transform_5(%arg0: i32) -> (i32, i32) {
    %c0_i32 = arith.constant 0 : i32
    %c0_i32_0 = arith.constant 0 : i32
    return %arg0, %c0_i32 : i32, i32
  }
}

</mosaic_0001>

<bundles_post_ra>
// kernel: tpu_custom_call.1
= control target key start
LH: loop header
LB: loop body
LE: loop exit
PB: predicated region body
PF: predicated region fallthrough
CT: control target
= control target key end

     0   :  { %10 = vsyncpa [#allocation3], 0  ;;  %s550_s0 = inlined_call_operand.hbm [shape: f32[16,128], index: 0, kind: input, shape index: {}]   ;;  %s551_s1 = inlined_call_operand.hbm [shape: f32[128,128], index: 1, kind: input, shape index: {}]   ;;  %s552_s2 = inlined_call_operand.vmem [shape: f32[1,128], index: 2, kind: input, shape index: {}]   ;;  %s553_s3 = inlined_call_operand.hbm [shape: f32[128,128], index: 3, kind: input, shape index: {}]   ;;  %s554_s4 = inlined_call_operand.vmem [shape: f32[1,128], index: 4, kind: input, shape index: {}]   ;;  %s555_s5 = inlined_call_operand.hbm [shape: f32[16,128], index: 5, kind: output, shape index: {}]  }
   0x1   :  { %11 = vsyncpa [#allocation6], 0 }
   0x2   :  { %12 = vsyncpa [#allocation4], 0  ;;  %s484_s18 = smov [#allocation5]   ;;  %s485_s20 = smov [#allocation2]  }
   0x3   :  { %s30_s19 = sshll.u32 %s484_s18, 4  ;;  %s18_s21 = sshll.u32 %s485_s20, 4  ;;  %s31_s19 = int_to_ptr.vmem [resolvable:$true] %s30_s19  ;;  %s19_s21 = int_to_ptr.vmem [resolvable:$true] %s18_s21 }
   0x4   :  { %s406_s22 = scalar_lea.vmem %s31_s19, 2048  ;;  %p411_p1 = scmp.lt.s32.totalorder %s31_s19, %s31_s19 }
   0x5   :  { %p407_p0 = scmp.ne.s32.totalorder %s31_s19, %s406_s22  ;;  %p412_p2 = scmp.lt.s32.totalorder %s406_s22, %s406_s22 }
   0x7   :  { %p413_p3 = por %p412_p2, %p411_p1 }
   0x9   :  { %p414_p4 = pnand %p413_p3, %p407_p0 }
   0xb   :  { %417 = shalt.err (!%p414_p4)
}
   0xc   :  { %s486_s23 = smov 128   ;;  %s487_s24 = smov 8  }
   0xd   :  { %36 = dma.hbm_to_vmem [thread:$0]  %s551_s1, 2048, %s31_s19, [#allocation6], %s486_s23, %s486_s23, %s487_s24  }
   0xe   :  { %s426_s27 = scalar_lea.vmem %s19_s21, 256  ;;  %p431_p6 = scmp.lt.s32.totalorder %s19_s21, %s19_s21 }
   0xf   :  { %p427_p5 = scmp.ne.s32.totalorder %s19_s21, %s426_s27  ;;  %p432_p7 = scmp.lt.s32.totalorder %s426_s27, %s426_s27 }
  0x11   :  { %p433_p8 = por %p432_p7, %p431_p6 }
  0x13   :  { %p434_p9 = pnand %p433_p8, %p427_p5 }
  0x15   :  { %437 = shalt.err (!%p434_p9)
}
  0x16   :  { %24 = dma.hbm_to_vmem [thread:$0]  %s550_s0, 256, %s19_s21, [#allocation3], %s486_s23, %s486_s23, %s487_s24  }
  0x17   :  { %s488_s30 = smov [#allocation7]  }
  0x18   :  { %s44_s6 = sshll.u32 %s488_s30, 4  ;;  %s45_s6 = int_to_ptr.vmem [resolvable:$true] %s44_s6 }
  0x19   :  { %s446_s7 = scalar_lea.vmem %s45_s6, 2048  ;;  %p451_p11 = scmp.lt.s32.totalorder %s45_s6, %s45_s6 }
  0x1a   :  { %p447_p10 = scmp.ne.s32.totalorder %s45_s6, %s446_s7  ;;  %p452_p12 = scmp.lt.s32.totalorder %s446_s7, %s446_s7 }
  0x1c   :  { %p453_p13 = por %p452_p12, %p451_p11 }
  0x1e   :  { %p454_p0 = pnand %p453_p13, %p447_p10 }
  0x20   :  { %457 = shalt.err (!%p454_p0)
}
  0x21   :  { %50 = dma.hbm_to_vmem [thread:$0]  %s553_s3, 2048, %s45_s6, [#allocation6], %s486_s23, %s486_s23, %s487_s24  }
  0x22   :  { %478 = dma.done.wait [#allocation3], 256  }
  0x23   :  { %479 = vsyncadd [#allocation3], 4294967040 }
  0x24   :  { %480 = dma.done.wait [#allocation6], 4096  }
  0x25   :  { %481 = vsyncadd [#allocation6], 4294963200  ;;  %v79_v0 = vld [vmem:[#allocation5 + $0x78] sm:$0xff]  ;;  %v78_v1 = vld [vmem:[#allocation5 + $0x70] sm:$0xff]  ;;  %s489_s11 = smov [#allocation8]  }
  0x26   :  { %322 = vmatprep.subr.mxu0 %v79_v0  ;;  %v77_v2 = vld [vmem:[#allocation5 + $0x68] sm:$0xff]  ;;  %v76_v3 = vld [vmem:[#allocation5 + $0x60] sm:$0xff]  ;;  %v62_v4 = vld [vmem:[#allocation2] sm:$0xff]  ;;  %s271_s12 = sshll.u32 %s489_s11, 4  ;;  %s272_s12 = int_to_ptr.vmem [resolvable:$true] %s271_s12 }
  0x27   :  { %323 = vmatpush3.msra.mxu0 %v79_v0  ;;  %v75_v5 = vld [vmem:[#allocation5 + $0x58] sm:$0xff]  ;;  %354 = vmatprep.mubr.f32.mxu0 %v62_v4  ;;  %v178_v7 = vld [vmem:[#allocation7 + $0x70] sm:$0xff]  ;;  %v177_v9 = vld [vmem:[#allocation7 + $0x68] sm:$0xff]  ;;  %p463_p2 = scmp.lt.s32.totalorder %s272_s12, %s272_s12 }
  0x28   :  { %324 = vmatprep.subr.mxu0 %v78_v1  ;;  %v179_v6 = vld [vmem:[#allocation7 + $0x78] sm:$0xff]  ;;  %v74_v8 = vld [vmem:[#allocation5 + $0x50] sm:$0xff]  ;;  %v73_v10 = vld [vmem:[#allocation5 + $0x48] sm:$0xff] }
  0x29   :  { %325 = vmatpush3.msra.mxu0 %v78_v1  ;;  %357 = vmatprep.subr.mxu1 %v179_v6  ;;  %v176_v11 = vld [vmem:[#allocation7 + $0x60] sm:$0xff]  ;;  %v175_v13 = vld [vmem:[#allocation7 + $0x58] sm:$0xff]  ;;  %v174_v15 = vld [vmem:[#allocation7 + $0x50] sm:$0xff] }
  0x2a   :  { %326 = vmatprep.subr.mxu0 %v77_v2  ;;  %358 = vmatpush3.msra.mxu1 %v179_v6  ;;  %v72_v12 = vld [vmem:[#allocation5 + $0x40] sm:$0xff]  ;;  %v71_v14 = vld [vmem:[#allocation5 + $0x38] sm:$0xff]  ;;  %v70_v16 = vld [vmem:[#allocation5 + $0x30] sm:$0xff] }
  0x2b   :  { %327 = vmatpush3.msra.mxu0 %v77_v2  ;;  %359 = vmatprep.subr.mxu1 %v178_v7  ;;  %v173_v17 = vld [vmem:[#allocation7 + $0x48] sm:$0xff]  ;;  %v172_v19 = vld [vmem:[#allocation7 + $0x40] sm:$0xff]  ;;  %v171_v21 = vld [vmem:[#allocation7 + $0x38] sm:$0xff] }
  0x2c   :  { %328 = vmatprep.subr.mxu0 %v76_v3  ;;  %360 = vmatpush3.msra.mxu1 %v178_v7  ;;  %v69_v18 = vld [vmem:[#allocation5 + $0x28] sm:$0xff]  ;;  %v68_v20 = vld [vmem:[#allocation5 + $0x20] sm:$0xff]  ;;  %v67_v22 = vld [vmem:[#allocation5 + $0x18] sm:$0xff] }
  0x2d   :  { %329 = vmatpush3.msra.mxu0 %v76_v3  ;;  %361 = vmatprep.subr.mxu1 %v177_v9  ;;  %v170_v23 = vld [vmem:[#allocation7 + $0x30] sm:$0xff]  ;;  %v169_v25 = vld [vmem:[#allocation7 + $0x28] sm:$0xff]  ;;  %v168_v27 = vld [vmem:[#allocation7 + $0x20] sm:$0xff] }
  0x2e   :  { %330 = vmatprep.subr.mxu0 %v75_v5  ;;  %362 = vmatpush3.msra.mxu1 %v177_v9  ;;  %v66_v24 = vld [vmem:[#allocation5 + $0x10] sm:$0xff]  ;;  %v65_v26 = vld [vmem:[#allocation5 + $0x8] sm:$0xff]  ;;  %v64_v28 = vld [vmem:[#allocation5] sm:$0xff] }
  0x2f   :  { %331 = vmatpush3.msra.mxu0 %v75_v5  ;;  %363 = vmatprep.subr.mxu1 %v176_v11  ;;  %v63_v29 = vld [vmem:[#allocation2 + $0x8] sm:$0xff]  ;;  %v166_v31 = vld [vmem:[#allocation7 + $0x10] sm:$0xff]  ;;  %v165_v32 = vld [vmem:[#allocation7 + $0x8] sm:$0xff] }
  0x30   :  { %332 = vmatprep.subr.mxu0 %v74_v8  ;;  %364 = vmatpush3.msra.mxu1 %v176_v11  ;;  %v167_v30 = vld [vmem:[#allocation7 + $0x18] sm:$0xff]  ;;  %v164_v33 = vld [vmem:[#allocation7] sm:$0xff]  ;;  %v284_v34 = vld [vmem:[%s552_s2] ss:$0 sm:$0xff]  ;;  %s458_s2 = scalar_lea.vmem %s272_s12, 256 }
  0x31   :  { %333 = vmatpush3.msra.mxu0 %v74_v8  ;;  %365 = vmatprep.subr.mxu1 %v175_v13  ;;  %v285_v41 = vld [vmem:[%s554_s4] ss:$0 sm:$0xff]  ;;  %p459_p1 = scmp.ne.s32.totalorder %s272_s12, %s458_s2  ;;  %p464_p3 = scmp.lt.s32.totalorder %s458_s2, %s458_s2 }
  0x32   :  { %334 = vmatprep.subr.mxu0 %v73_v10  ;;  %366 = vmatpush3.msra.mxu1 %v175_v13 }
  0x33   :  { %335 = vmatpush3.msra.mxu0 %v73_v10  ;;  %367 = vmatprep.subr.mxu1 %v174_v15  ;;  %p465_p4 = por %p464_p3, %p463_p2 }
  0x34   :  { %336 = vmatprep.subr.mxu0 %v72_v12  ;;  %368 = vmatpush3.msra.mxu1 %v174_v15 }
  0x35   :  { %337 = vmatpush3.msra.mxu0 %v72_v12  ;;  %369 = vmatprep.subr.mxu1 %v173_v17  ;;  %p466_p5 = pnand %p465_p4, %p459_p1 }
  0x36   :  { %338 = vmatprep.subr.mxu0 %v71_v14  ;;  %370 = vmatpush3.msra.mxu1 %v173_v17 }
  0x37   :  { %339 = vmatpush3.msra.mxu0 %v71_v14  ;;  %371 = vmatprep.subr.mxu1 %v172_v19 }
  0x38   :  { %340 = vmatprep.subr.mxu0 %v70_v16  ;;  %372 = vmatpush3.msra.mxu1 %v172_v19 }
  0x39   :  { %341 = vmatpush3.msra.mxu0 %v70_v16  ;;  %373 = vmatprep.subr.mxu1 %v171_v21 }
  0x3a   :  { %342 = vmatprep.subr.mxu0 %v69_v18  ;;  %374 = vmatpush3.msra.mxu1 %v171_v21 }
  0x3b   :  { %343 = vmatpush3.msra.mxu0 %v69_v18  ;;  %375 = vmatprep.subr.mxu1 %v170_v23 }
  0x3c   :  { %344 = vmatprep.subr.mxu0 %v68_v20  ;;  %376 = vmatpush3.msra.mxu1 %v170_v23 }
  0x3d   :  { %345 = vmatpush3.msra.mxu0 %v68_v20  ;;  %377 = vmatprep.subr.mxu1 %v169_v25 }
  0x3e   :  { %346 = vmatprep.subr.mxu0 %v67_v22  ;;  %378 = vmatpush3.msra.mxu1 %v169_v25 }
  0x3f   :  { %347 = vmatpush3.msra.mxu0 %v67_v22  ;;  %379 = vmatprep.subr.mxu1 %v168_v27 }
  0x40   :  { %348 = vmatprep.subr.mxu0 %v66_v24  ;;  %380 = vmatpush3.msra.mxu1 %v168_v27 }
  0x41   :  { %349 = vmatpush3.msra.mxu0 %v66_v24  ;;  %381 = vmatprep.subr.mxu1 %v167_v30 }
  0x42   :  { %350 = vmatprep.subr.mxu0 %v65_v26  ;;  %382 = vmatpush3.msra.mxu1 %v167_v30 }
  0x43   :  { %351 = vmatpush3.msra.mxu0 %v65_v26  ;;  %383 = vmatprep.subr.mxu1 %v166_v31 }
  0x44   :  { %352 = vmatprep.subr.mxu0 %v64_v28  ;;  %384 = vmatpush3.msra.mxu1 %v166_v31 }
  0x45   :  { %353 = vmatpush3.msra.mxu0 %v64_v28  ;;  %385 = vmatprep.subr.mxu1 %v165_v32 }
  0x46   :  { %355 = vmatmul.mubr.f32.vlgmr.msra.gmra.mxu0 %v63_v29  ;;  %386 = vmatpush3.msra.mxu1 %v165_v32 }
  0x47   :  { %387 = vmatprep.subr.mxu1 %v164_v33 }
  0x48   :  { %388 = vmatpush3.msra.mxu1 %v164_v33 }
 0x106   :  { %v356_v35 = vpop.f32.mrf.mxu0 }
 0x107   :  { %v159_v36 = vadd.f32 %v356_v35, %v284_v34 }
 0x108   :  { %v153_v37 = vpop.f32.mrf.mxu0 }
 0x109   :  { %v154_v38 = vadd.f32 %v284_v34, %v153_v37  ;;  %v163_v40 = vmax.f32 %v159_v36, 0.0 }
 0x10b   :  { %v162_v39 = vmax.f32 %v154_v38, 0.0 }
 0x10d   :  { %389 = vmatprep.mubr.f32.mxu1 %v162_v39 }
 0x10e   :  { %390 = vmatmul.mubr.f32.vlgmr.msra.gmra.mxu1 %v163_v40 }
 0x1ce   :  { %v391_v42 = vpop.f32.mrf.mxu1 }
 0x1cf   :  { %v259_v43 = vadd.f32 %v391_v42, %v285_v41 }
 0x1d0   :  { %v253_v44 = vpop.f32.mrf.mxu1 }
 0x1d1   :  { %v263_v45 = vmax.f32 %v259_v43, 0.0  ;;  %v254_v46 = vadd.f32 %v285_v41, %v253_v44 }
 0x1d3   :  { %265 = vst [vmem:[#allocation8 + $0x8] sm:$0xff] %v263_v45  ;;  %v262_v47 = vmax.f32 %v254_v46, 0.0 }
 0x1d5   :  { %264 = vst [vmem:[#allocation8] sm:$0xff] %v262_v47 }
 0x1d6   :  { %469 = shalt.err (!%p466_p5)
}
 0x1d7   :  { %277 = dma.vmem_to_hbm [thread:$0]  %s272_s12, 256, %s555_s5, [#allocation4], %s486_s23, %s486_s23, %s487_s24  }
 0x1d8   :  { %482 = dma.done.wait [#allocation4], 256  }
 0x1d9   :  { %483 = vsyncadd [#allocation4], 4294967040 }
 0x1da   :  { %281 = vsyncpa [#allocation3], 1 }
 0x1db   :  { %282 = vsyncpa [#allocation6], 1 }
 0x1dc   :  { %283 = vsyncpa [#allocation4], 1 }

</bundles_post_ra>
